<compile_context>
chip_gen: v6e
topology: v6e:2x2x1
jax: 0.10.0
libtpu: 0.0.40
codegen_flags: <defaults>
</compile_context>

<pallas_src>
import jax
import jax.numpy as jnp
from jax.experimental import pallas as pl
from jax.experimental.pallas import tpu as pltpu


def _online_lse_kernel(logits_ref, lab_ref, out_ref, m_ref, l_ref):
    """Grid (B, nT, nV). Blocks: logits (1,tT,tV) native dtype, lab (1,tT,1) f32,
    out (1,tT,1) f32 per-row NLL. Online LSE across the vocab (innermost) axis."""
    v = pl.program_id(2)
    nv = pl.num_programs(2)

    # Per-(sample, T-tile) init of the online-LSE state.
    @pl.when(v == 0)
    def _():
        m_ref[...] = jnp.full_like(m_ref, -jnp.inf)
        l_ref[...] = jnp.zeros_like(l_ref)

    xn = logits_ref[0]                                        # (tT, tV), native dtype
    m_old = m_ref[...]                                        # (tT, 1) f32
    tile_max = jnp.max(xn, axis=-1, keepdims=True).astype(jnp.float32)
    m_new = jnp.maximum(m_old, tile_max)
    # f32 cast only inside the exp expression (no materialized f32 tile temp).
    l_ref[...] = (l_ref[...] * jnp.exp(m_old - m_new)
                  + jnp.sum(jnp.exp(xn.astype(jnp.float32) - m_new),
                            axis=-1, keepdims=True))
    m_ref[...] = m_new

    # Finalize this (sample, T-tile): per-row NLL = lse - label_logit.
    @pl.when(v == nv - 1)
    def _():
        lse = m_ref[...] + jnp.log(l_ref[...])                # (tT, 1)
        out_ref[0] = lse - lab_ref[0]


def _tile(dim: int, target: int, align: int):
    """Pick (tile, padded_dim): tile divides padded_dim; tile % align == 0 or tile == dim."""
    if dim <= target:
        return dim, dim                        # full-extent block (always legal)
    best = max(align, (target // align) * align)
    t = best
    while t >= align:                          # prefer a divisor -> no padding
        if dim % t == 0:
            return t, dim
        t -= align
    padded = -(-dim // best) * best
    return best, padded


def _pick_vmem_limit(input_block_bytes: int, f32_tile_bytes: int) -> int:
    """Double-buffered input + in-flight f32 cast + slack, clamped to device VMEM."""
    needed = 2 * input_block_bytes + f32_tile_bytes + (4 << 20)
    try:
        cap = int(getattr(pltpu.get_tpu_info(), "vmem_capacity_bytes", 64 << 20))
    except Exception:  # conservative fallback = v7x per-TC capacity
        cap = 64 << 20
    ceiling = max(32 << 20, cap - (8 << 20))
    return int(min(max(32 << 20, needed), ceiling))


def pallas_perplexity(logits, labels, reduce=True, tile_t=256, tile_v=8192):
    """logits: (B, S, V) float (f32 or bf16), labels: (B, S) int. Mirrors Perplexity.forward."""
    B, S, V = logits.shape
    T = S - 1

    # Glue: shift (plain JAX slicing). Keep logits native dtype for the DMA.
    shift_logits = logits[:, :-1, :]                           # (B, T, V)
    shift_labels = labels[:, 1:].astype(jnp.int32)             # (B, T)

    # Hoisted label-logit gather: tiny (B*T-element) HBM gather in XLA, so the
    # kernel needs no iota/compare/select/lane-reduce per vocab tile.
    label_logit = jnp.take_along_axis(
        shift_logits, shift_labels[:, :, None], axis=-1).astype(jnp.float32)  # (B, T, 1)

    itemsize = jnp.dtype(logits.dtype).itemsize
    sub_align = {4: 8, 2: 16, 1: 32}.get(itemsize, 8)          # dtype-aware sublane align
    tT, Tp = _tile(T, tile_t, sub_align)                       # sequence tile
    tV, Vp = _tile(V, tile_v, 128)                             # vocab tile (lane-aligned)

    if Tp != T or Vp != V:
        # Pad logits with a very negative (finite) value: exp underflows to 0 in
        # the LSE; padded rows are sliced off after the kernel.
        shift_logits = jnp.pad(
            shift_logits, ((0, 0), (0, Tp - T), (0, Vp - V)),
            constant_values=-1e30)
    if Tp != T:
        label_logit = jnp.pad(label_logit, ((0, 0), (0, Tp - T), (0, 0)))

    grid = (B, Tp // tT, Vp // tV)
    vmem_limit = _pick_vmem_limit(tT * tV * itemsize, tT * tV * 4)

    per_row_nll = pl.pallas_call(
        _online_lse_kernel,
        out_shape=jax.ShapeDtypeStruct((B, Tp, 1), jnp.float32),
        grid=grid,
        in_specs=[
            pl.BlockSpec((1, tT, tV), lambda b, t, v: (b, t, v)),
            pl.BlockSpec((1, tT, 1), lambda b, t, v: (b, t, 0)),
        ],
        out_specs=pl.BlockSpec((1, tT, 1), lambda b, t, v: (b, t, 0)),
        scratch_shapes=[
            pltpu.VMEM((tT, 1), jnp.float32),   # running max  m
            pltpu.VMEM((tT, 1), jnp.float32),   # running sum-exp l
        ],
        compiler_params=pltpu.CompilerParams(
            # b and t are independent (per-T-tile outputs) -> both megacore-parallel;
            # vocab is the online-LSE reduction axis.
            dimension_semantics=("parallel", "parallel", "arbitrary"),
            vmem_limit_bytes=vmem_limit,
        ),
    )(shift_logits, label_logit)

    nll = per_row_nll[:, :T, 0]                                # drop padded rows
    per_sample = jnp.exp(jnp.mean(nll, axis=-1))               # (B,)
    if reduce:
        return jnp.mean(per_sample)
    return per_sample


def _reference_perplexity(logits, labels, reduce=True):
    """Pure-JAX reference matching the PyTorch module semantics."""
    shift_logits = logits[:, :-1, :].astype(jnp.float32)
    shift_labels = labels[:, 1:]
    logp = jax.nn.log_softmax(shift_logits, axis=-1)
    nll = -jnp.take_along_axis(logp, shift_labels[:, :, None], axis=-1)[..., 0]
    per_sample = jnp.exp(jnp.mean(nll, axis=-1))
    return jnp.mean(per_sample) if reduce else per_sample


if __name__ == "__main__":
    key = jax.random.PRNGKey(0)
    k1, k2, k3, k4 = jax.random.split(key, 4)

    # Config 1: exercises T- and V-tiling (grid = (2, 2, 4)), no padding, f32.
    B, S, V = 2, 17, 512  # T = 16
    logits = jax.random.normal(k1, (B, S, V), dtype=jnp.float32)
    labels = jax.random.randint(k2, (B, S), 0, V, dtype=jnp.int32)
    out = jax.block_until_ready(
        pallas_perplexity(logits, labels, reduce=True, tile_t=8, tile_v=128))
    ref = _reference_perplexity(logits, labels, reduce=True)
    assert jnp.allclose(out, ref, rtol=1e-5, atol=1e-5), (out, ref)

    # Config 1b: same inputs through the default (large-tile) path -> full-extent blocks.
    out_d = jax.block_until_ready(pallas_perplexity(logits, labels, reduce=False))
    ref_d = _reference_perplexity(logits, labels, reduce=False)
    assert jnp.allclose(out_d, ref_d, rtol=1e-5, atol=1e-5), (out_d, ref_d)

    # Config 2: ragged T and V (padding path), bf16 logits streamed as-is,
    # dtype-aware sublane alignment bumps tT to 16.
    B2, S2, V2 = 2, 14, 320  # T = 13 -> padded to 16, V padded to 512
    logits2 = jax.random.normal(k3, (B2, S2, V2), dtype=jnp.bfloat16)
    labels2 = jax.random.randint(k4, (B2, S2), 0, V2, dtype=jnp.int32)
    out2 = jax.block_until_ready(
        pallas_perplexity(logits2, labels2, reduce=False, tile_t=8, tile_v=256))
    ref2 = _reference_perplexity(logits2, labels2, reduce=False)
    assert jnp.allclose(out2, ref2, rtol=2e-3, atol=2e-3), (out2, ref2)

    print("KERNEL_OK")
</pallas_src>

<mosaic_0001>
module attributes {stable_mosaic.version = 11 : i64} {
  func.func @_online_lse_kernel(%arg0: i32, %arg1: i32, %arg2: i32, %arg3: memref<1x8x128xf32, #tpu.memory_space<vmem>>, %arg4: memref<1x8x1xf32, #tpu.memory_space<vmem>>, %arg5: memref<1x8x1xf32, #tpu.memory_space<vmem>>, %arg6: memref<8x1xf32, #tpu.memory_space<vmem>>, %arg7: memref<8x1xf32, #tpu.memory_space<vmem>>) attributes {dimension_semantics = [#tpu.dimension_semantics<parallel>, #tpu.dimension_semantics<parallel>, #tpu.dimension_semantics<arbitrary>], iteration_bounds = array<i64: 2, 2, 4>, scalar_prefetch = 0 : i64, scratch_operands = 2 : i64, tpu.core_type = #tpu.core_type<tc>, window_params = [{transform_indices = @transform_0, window_bounds = array<i64: 1, 8, 128>}, {transform_indices = @transform_1, window_bounds = array<i64: 1, 8, 1>}, {transform_indices = @transform_2, window_bounds = array<i64: 1, 8, 1>}]} {
    %c0_i32 = arith.constant 0 : i32
    %0 = arith.cmpi eq, %arg2, %c0_i32 : i32
    %1 = arith.extui %0 : i1 to i32
    %c0_i32_0 = arith.constant 0 : i32
    %2 = arith.cmpi ne, %1, %c0_i32_0 : i32
    scf.if %2 {
      %cst_13 = arith.constant 0xFF800000 : f32
      %24 = vector.broadcast %cst_13 : f32 to vector<8x1xf32>
      %c0_14 = arith.constant 0 : index
      %c0_15 = arith.constant 0 : index
      %25 = vector.load %arg6[%c0_14, %c0_15] : memref<8x1xf32, #tpu.memory_space<vmem>>, vector<8x1xf32>
      tpu.vector_store %arg6[%c0_14, %c0_15], %24 {strides = array<i32>} : memref<8x1xf32, #tpu.memory_space<vmem>>, vector<8x1xf32>,
      %cst_16 = arith.constant 0.000000e+00 : f32
      %26 = vector.broadcast %cst_16 : f32 to vector<8x1xf32>
      %c0_17 = arith.constant 0 : index
      %c0_18 = arith.constant 0 : index
      %27 = vector.load %arg7[%c0_17, %c0_18] : memref<8x1xf32, #tpu.memory_space<vmem>>, vector<8x1xf32>
      tpu.vector_store %arg7[%c0_17, %c0_18], %26 {strides = array<i32>} : memref<8x1xf32, #tpu.memory_space<vmem>>, vector<8x1xf32>,
    } else {
    }
    %c0 = arith.constant 0 : index
    %c0_1 = arith.constant 0 : index
    %c0_2 = arith.constant 0 : index
    %3 = vector.load %arg3[%c0, %c0_1, %c0_2] : memref<1x8x128xf32, #tpu.memory_space<vmem>>, vector<1x8x128xf32>
    %4 = vector.shape_cast %3 : vector<1x8x128xf32> to vector<8x128xf32>
    %c0_3 = arith.constant 0 : index
    %c0_4 = arith.constant 0 : index
    %5 = vector.load %arg6[%c0_3, %c0_4] : memref<8x1xf32, #tpu.memory_space<vmem>>, vector<8x1xf32>
    %cst = arith.constant dense<0xFF800000> : vector<8xf32>
    %6 = vector.multi_reduction <maximumf>, %4, %cst [1] : vector<8x128xf32> to vector<8xf32>
    %7 = vector.shape_cast %6 : vector<8xf32> to vector<8x1xf32>
    %8 = arith.maximumf %5, %7 : vector<8x1xf32>
    %c0_5 = arith.constant 0 : index
    %c0_6 = arith.constant 0 : index
    %9 = vector.load %arg7[%c0_5, %c0_6] : memref<8x1xf32, #tpu.memory_space<vmem>>, vector<8x1xf32>
    %10 = arith.subf %5, %8 : vector<8x1xf32>
    %11 = math.exp %10 : vector<8x1xf32>
    %12 = arith.mulf %9, %11 : vector<8x1xf32>
    %13 = vector.broadcast %8 : vector<8x1xf32> to vector<8x128xf32>
    %14 = arith.subf %4, %13 : vector<8x128xf32>
    %15 = math.exp %14 : vector<8x128xf32>
    %cst_7 = arith.constant dense<0.000000e+00> : vector<8xf32>
    %16 = vector.multi_reduction <add>, %15, %cst_7 [1] : vector<8x128xf32> to vector<8xf32>
    %17 = vector.shape_cast %16 : vector<8xf32> to vector<8x1xf32>
    %18 = arith.addf %12, %17 : vector<8x1xf32>
    %c0_8 = arith.constant 0 : index
    %c0_9 = arith.constant 0 : index
    %19 = vector.load %arg7[%c0_8, %c0_9] : memref<8x1xf32, #tpu.memory_space<vmem>>, vector<8x1xf32>
    tpu.vector_store %arg7[%c0_8, %c0_9], %18 {strides = array<i32>} : memref<8x1xf32, #tpu.memory_space<vmem>>, vector<8x1xf32>,
    %c0_10 = arith.constant 0 : index
    %c0_11 = arith.constant 0 : index
    %20 = vector.load %arg6[%c0_10, %c0_11] : memref<8x1xf32, #tpu.memory_space<vmem>>, vector<8x1xf32>
    tpu.vector_store %arg6[%c0_10, %c0_11], %8 {strides = array<i32>} : memref<8x1xf32, #tpu.memory_space<vmem>>, vector<8x1xf32>,
    %c3_i32 = arith.constant 3 : i32
    %21 = arith.cmpi eq, %arg2, %c3_i32 : i32
    %22 = arith.extui %21 : i1 to i32
    %c0_i32_12 = arith.constant 0 : i32
    %23 = arith.cmpi ne, %22, %c0_i32_12 : i32
    scf.if %23 {
      %c0_13 = arith.constant 0 : index
      %c0_14 = arith.constant 0 : index
      %24 = vector.load %arg6[%c0_13, %c0_14] : memref<8x1xf32, #tpu.memory_space<vmem>>, vector<8x1xf32>
      %c0_15 = arith.constant 0 : index
      %c0_16 = arith.constant 0 : index
      %25 = vector.load %arg7[%c0_15, %c0_16] : memref<8x1xf32, #tpu.memory_space<vmem>>, vector<8x1xf32>
      %26 = math.log %25 : vector<8x1xf32>
      %27 = arith.addf %24, %26 : vector<8x1xf32>
      %c0_17 = arith.constant 0 : index
      %c0_18 = arith.constant 0 : index
      %c0_19 = arith.constant 0 : index
      %28 = vector.load %arg4[%c0_17, %c0_18, %c0_19] : memref<1x8x1xf32, #tpu.memory_space<vmem>>, vector<1x8x1xf32>
      %29 = vector.shape_cast %28 : vector<1x8x1xf32> to vector<8x1xf32>
      %30 = arith.subf %27, %29 : vector<8x1xf32>
      %c0_20 = arith.constant 0 : index
      %c0_21 = arith.constant 0 : index
      %c0_22 = arith.constant 0 : index
      %31 = vector.load %arg5[%c0_20, %c0_21, %c0_22] : memref<1x8x1xf32, #tpu.memory_space<vmem>>, vector<1x8x1xf32>
      %32 = vector.shape_cast %31 : vector<1x8x1xf32> to vector<8x1xf32>
      %33 = vector.shape_cast %30 : vector<8x1xf32> to vector<1x8x1xf32>
      tpu.vector_store %arg5[%c0_20, %c0_21, %c0_22], %33 {strides = array<i32>} : memref<1x8x1xf32, #tpu.memory_space<vmem>>, vector<1x8x1xf32>,
    } else {
    }
    return
  }
  func.func @transform_0(%arg0: i32, %arg1: i32, %arg2: i32) -> (i32, i32, i32) {
    %c0_i32 = arith.constant 0 : i32
    return %arg0, %arg1, %arg2 : i32, i32, i32
  }
  func.func @transform_1(%arg0: i32, %arg1: i32, %arg2: i32) -> (i32, i32, i32) {
    %c0_i32 = arith.constant 0 : i32
    %c0_i32_0 = arith.constant 0 : i32
    return %arg0, %arg1, %c0_i32 : i32, i32, i32
  }
  func.func @transform_2(%arg0: i32, %arg1: i32, %arg2: i32) -> (i32, i32, i32) {
    %c0_i32 = arith.constant 0 : i32
    %c0_i32_0 = arith.constant 0 : i32
    return %arg0, %arg1, %c0_i32 : i32, i32, i32
  }
}

</mosaic_0001>

<bundles_post_ra>
// kernel: tpu_custom_call.1
= control target key start
LH: loop header
LB: loop body
LE: loop exit
PB: predicated region body
PF: predicated region fallthrough
CT: control target
= control target key end

     0   :  { %7 = vsyncpa [#allocation5], 0  ;;  %s800_s0 = inlined_call_operand.hbm [shape: f32[2,16,512], index: 0, kind: input, shape index: {}]   ;;  %s801_s1 = inlined_call_operand.vmem [shape: f32[2,16,1], index: 1, kind: input, shape index: {}]   ;;  %s802_s2 = inlined_call_operand.vmem [shape: f32[2,16,1], index: 2, kind: output, shape index: {}]  }
   0x1   :  { %9 = vsyncpa [#allocation5 + $0x1], 0  ;;  %s636_s9 = smov 0   ;;  %s638_s10 = smov 0  }
   0x2   :  { %s640_s11 = smov 0   ;;  %s642_s12 = smov 0  }
   0x3   :  { %s644_s13 = smov 0   ;;  %s646_s14 = smov 0  }
   0x4   :  { %s648_s15 = smov 0   ;;  %s650_s16 = smov 0  }
   0x5   :  { %s652_s17 = smov 0   ;;  %s654_s18 = smov 0  }
   0x6 LB: > { %807 = sst [smem:[#allocation7_spill]] %s607_s16  ;;  %s390_s19 = sadd.s32 4294967295, %s615_s18   ;;  %s615_s18 = sphi %s654_s18, %s15_s18   ;;  %s611_s17 = sphi %s652_s17, %s824_s17   ;;  %s607_s16 = sphi %s650_s16, %s816_s16   ;;  %s603_s15 = sphi %s648_s15, %s823_s15   ;;  %s599_s14 = sphi %s646_s14, %s822_s14   ;;  %s595_s13 = sphi %s644_s13, %s814_s13   ;;  %s591_s12 = sphi %s642_s12, %s821_s12   ;;  %s587_s11 = sphi %s640_s11, %s820_s11   ;;  %s583_s10 = sphi %s638_s10, %s819_s10   ;;  %s579_s9 = sphi %s636_s9, %s818_s9  }
   0x7   : > { %s27_s20 = sadd.s32 1, %s603_s15  ;;  %s30_s21 = sadd.s32 1, %s607_s16 }
   0x8   : > { %p28_p0 = scmp.ge.s32.totalorder %s27_s20, 4  ;;  %s34_s22 = sadd.s32 1, %s611_s17 }
   0x9   : > { %s45_s23 = sadd.s32 1, %s587_s11  ;;  %p52_p1 = scmp.ne.s32.totalorder %s587_s11, %s583_s10 }
   0xa   : > { %s826_s20 = smov (%p28_p0, %s27_s20), 0  ;;  %s828_s21 = smov (!%p28_p0, %s30_s21), %s607_s16 }
   0xb   : > { %808 = sst [smem:[#allocation8_spill]] %s826_s20  ;;  %s41_s24 = ssub.s32 %s603_s15, %s826_s20 }
   0xc   : > { %p32_p2 = scmp.ge.s32.totalorder %s828_s21, 2  ;;  %p53_p3 = scmp.eq.s32.totalorder %s615_s18, 0 }
   0xd   : > { %p58_p4 = scmp.ne.s32.totalorder %s583_s10, %s579_s9  ;;  %p59_p5 = scmp.eq.s32.totalorder %s390_s19, 0 }
   0xe   : > { %s830_s21 = smov (%p32_p2, %s828_s21), 0  ;;  %s832_s22 = smov (!%p32_p2, %s34_s22), %s611_s17 }
   0xf   : > { %809 = sst [smem:[#allocation9_spill]] %s830_s21  ;;  %s39_s25 = ssub.s32 %s607_s16, %s830_s21 }
  0x10   : > { %p703_p6 = por %p53_p3, %p52_p1  ;;  %p36_p7 = scmp.ge.s32.totalorder %s832_s22, 2 }
  0x11   : > { %p707_p8 = por %p59_p5, %p58_p4  ;;  %p414_p9 = scmp.lt.s32.totalorder %s615_s18, 16 }
  0x12   : > { %s834_s22 = smov (%p36_p7, %s832_s22), 0  ;;  %s138_s28 = sand.u32 1, %s587_s11  }
  0x13   : > { %812 = sst [smem:[#allocation10_spill]] %s834_s22  ;;  %s395_s29 = sshll.u32 %s607_s16, 2 }
  0x14   : > { %s38_s30 = ssub.s32 %s611_s17, %s834_s22  ;;  %s394_s4 = sshll.u32 %s138_s28, 3 }
  0x15   : > { %s40_s3 = sor.u32 %s39_s25, %s38_s30  ;;  %s147_s6 = sadd.s32 %s603_s15, %s395_s29 }
  0x16   : > { %s42_s5 = sor.u32 %s41_s24, %s40_s3  ;;  %s396_s7 = sshll.u32 %s611_s17, 3 }
  0x17   : > { %p43_p10 = scmp.eq.s32.totalorder %s42_s5, 0  ;;  %s142_s8 = scalar_lea.vmem [#allocation4], %s394_s4 }
  0x18   : > { %s153_s9 = sshll.u32 %s142_s8, 4  ;;  %s149_s21 = sadd.s32 %s396_s7, %s147_s6  ;;  %s154_s9 = int_to_ptr.vmem [resolvable:$true] %s153_s9 }
  0x19   : > { %s721_s19 = scalar_select %p43_p10, %s587_s11, %s45_s23  }
  0x1a   : > { %s397_s20 = sshll.u32 %s149_s21, 7  ;;  %p727_p11 = pnand %p414_p9, %p703_p6 }
  0x1b   : > { %s151_s24 = scalar_lea.hbm %s800_s0, %s397_s20  ;;  %p398_p12 = scmp.ge.s32.totalorder %s615_s18, 1 }
  0x1c   : > { %p169_p13 = scmp.lt.s32.totalorder %s615_s18, 17  ;;  %s139_s29 = scalar_lea.sflag [#allocation5], %s138_s28 }
  0x1d   : > { %p507_p0 = pneg %p727_p11  ;;  %s518_s23 = scalar_lea.vmem %s154_s9, 128 }
  0x1e   : > { %p519_p1 = scmp.ne.s32.totalorder %s154_s9, %s518_s23  ;;  %s617_s21 = smov [#allocation4]  }
  0x1f   : > { %s523_s26 = sshll.u32 %s617_s21, 4  ;;  %s524_s26 = int_to_ptr.vmem [resolvable:$false] %s523_s26 }
  0x20   : > { %p521_p2 = pnand %p519_p1, %p507_p0  ;;  %s525_s30 = scalar_lea.vmem %s524_s26, 256 }
  0x21   : > { %p526_p4 = scmp.lt.s32.totalorder %s154_s9, %s524_s26  ;;  %p527_p5 = scmp.lt.s32.totalorder %s525_s30, %s518_s23 }
  0x22   : > { %p522_p3 = pneg %p521_p2 }
  0x23   : > { %p528_p6 = por %p527_p5, %p526_p4 }
  0x25   : > { %p529_p7 = pnand %p528_p6, %p522_p3 }
  0x27   : > { %532 = shalt.err (!%p529_p7)
}
  0x28   : > { %413 = dma.hbm_to_vmem [thread:$0]  (!%p727_p11), %s151_s24, 128, %s154_s9, %s139_s29  }
  0x29   : > { %p170_p9 = pnand %p398_p12, %p169_p13 }
  0x2a   : > { %s175_s20 = sand.u32 (!%p170_p9), 1, %s583_s10  }
  0x2b   : > { %173 = sbr.rel (%p170_p9) target bundleno = 511 (0x1ff), region = 28  ;;  %s399_s22 = sshll.u32 (!%p170_p9), %s175_s20, 3 }
  0x2c   : > { %s176_s28 = scalar_lea.sflag (!%p170_p9), [#allocation5], %s175_s20  ;;  %s179_s3 = scalar_lea.vmem (!%p170_p9), [#allocation4], %s399_s22 }
  0x30   : > { %574 = dma.done.wait (%p707_p8), %s176_s28, 128  }
  0x31   : > { %576 = vsyncadd (%p707_p8), %s176_s28, 4294967168  ;;  %p211_p10 = scmp.lt.s32.totalorder %s599_s14, 1  ;;  %p213_p11 = scmp.lt.s32.totalorder %s595_s13, 1 }
  0x32   : > { %p404_p8 = scmp.ne.s32.totalorder %s591_s12, 0 }
  0x33   : > { %s836_s14 = smov (!%p211_p10, %s599_s14), 1  ;;  %s838_s13 = smov (!%p213_p11, %s595_s13), 1 }
  0x34   : > { %s400_s16 = sshll.u32 %s836_s14, 1  ;;  %230 = sbr.rel (%p404_p8) target bundleno = 59 (0x3b), region = 36 }
  0x35   : > { %s216_s4 = sadd.s32 %s400_s16, %s838_s13 }
  0x36   : > { %s401_s5 = sshll.u32 %s216_s4, 3 }
  0x37   : > { %s756_s8 = scalar_lea.vmem %s801_s1, %s401_s5  ;;  %s761_s27 = scalar_lea.vmem %s802_s2, %s401_s5 }
  0x39   : > { %vm231_vm0 = vcmask 7168   ;;  %v618_v0 = vmov -inf   ;;  %v619_v1 = vmov 0.0  }
  0x3a   : > { %232 = vst.msk [vmem:[#allocation2] sm:$0xff] %vm231_vm0, %v618_v0  ;;  %233 = vst.msk [vmem:[#allocation3] sm:$0xff] %vm231_vm0, %v619_v1 }
  0x3b PF: > { %v234_v2 = vld [vmem:[%s179_s3] sm:$0xff]  ;;  %v620_v3 = vmov 0   ;;  %vm255_vm1 = vcmask 7168   ;;  %p405_p12 = scmp.ne.s32.totalorder %s591_s12, 3 }
  0x3c   : > { %236 = vmax.xlane.f32.xlu0 %v234_v2 }
  0x3d   : > { %498 = vset.pattern.permute.xlu0 %v620_v3 }
  0x41   : > { %v235_v4 = vld [vmem:[#allocation2] sm:$0xff]  ;;  %v239_v14 = vld [vmem:[#allocation3] sm:$0xff] }
  0xc5   : > { %v237_v5 = vpop.xlane.xlu0 %236 }
  0xc6   : > { %v238_v6 = vmax.f32 %v235_v4, %v237_v5 }
  0xc8   : > { %v240_v7 = vsub.f32 %v235_v4, %v238_v6  ;;  %257 = vst.msk [vmem:[#allocation2] sm:$0xff] %vm255_vm1, %v238_v6  ;;  %246 = vperm.xlu0 %498, %v238_v6  }
  0xca   : > { %v241_v12 = vmul.f32 1.442695, %v240_v7 }
 0x143   : > { %v247_v8 = vpop.permute.xlu0 %246 }
 0x144   : > { %v249_v9 = vsub.f32 %v234_v2, %v247_v8 }
 0x146   : > { %v250_v10 = vmul.f32 1.442695, %v249_v9 }
 0x148   : > { %499 = vpow2.f32 %v250_v10 }
 0x149   : > { %501 = vpow2.f32 %v241_v12 }
 0x155   : > { %v500_v11 = vpop.eup %499 }
 0x156   : > { %252 = vadd.xlane.f32.xlu1 %v500_v11  ;;  %v502_v13 = vpop.eup %501 }
 0x157   : > { %v243_v15 = vmul.f32 %v502_v13, %v239_v14 }
 0x1de   : > { %261 = sbr.rel (%p405_p12) target bundleno = 511 (0x1ff), region = 40 }
 0x1df   : > { %v253_v16 = vpop.xlane.xlu1 %252 }
 0x1e0   : > { %v254_v17 = vadd.f32 %v253_v16, %v243_v15 }
 0x1e2   : > { %256 = vst.msk [vmem:[#allocation3] sm:$0xff] %vm255_vm1, %v254_v17 }
 0x1e3   : > { %v262_v20 = vld [vmem:[#allocation2] sm:$0xff] }
 0x1e4   : > { %v267_v22 = vld [vmem:[%s756_s8] sm:$0xff] }
 0x1e9   : > { %v263_v18 = vld [vmem:[#allocation3] sm:$0xff] }
 0x1ea   : > { %503 = vlog2.f32 %v263_v18 }
 0x1f7   : > { %v504_v19 = vpop.eup %503 }
 0x1f8   : > { %v265_v21 = vmul.f32 0.6931472, %v504_v19 }
 0x1fa   : > { %v266_v23 = vadd.f32 %v265_v21, %v262_v20 }
 0x1fc   : > { %v268_v24 = vsub.f32 %v266_v23, %v267_v22 }
 0x1fe   : > { %269 = vst.msk [vmem:[%s761_s27] sm:$0xff] %vm255_vm1, %v268_v24 }
 0x1ff PF: > { %s15_s18 = sadd.s32 1, %s615_s18   ;;  %s814_s13 = sld [smem:[#allocation7_spill]] }
 0x200   : > { %p12_p13 = scmp.ge.s32.totalorder %s15_s18, 18   ;;  %s815_s24 = sld [smem:[#allocation8_spill]] }
 0x201   : > { %s816_s16 = sld [smem:[#allocation9_spill]]  ;;  %s818_s9 = smov %s583_s10 }
 0x202   : > { %s817_s29 = sld [smem:[#allocation10_spill]]  ;;  %s819_s10 = smov %s587_s11 }
 0x203   : > { %s820_s11 = smov %s721_s19  ;;  %s821_s12 = smov %s603_s15 }
 0x204   : > { %s822_s14 = smov %s611_s17  ;;  %14 = sbr.rel (!%p12_p13) target bundleno = 6 (0x6), region = 79 }
 0x206   : > { %s823_s15 = smov %s815_s24 }
 0x208   : > { %s824_s17 = smov %s817_s29 }
 0x209   :  { %297 = vsyncpa [#allocation5], 1 }
 0x20a   :  { %299 = vsyncpa [#allocation5 + $0x1], 1 }

</bundles_post_ra>
